<compile_context>
chip_gen: v7x
topology: tpu7x:2x2x1
jax: 0.10.0
libtpu: 0.0.40
codegen_flags: <defaults>
</compile_context>

<pallas_src>
import numpy as np
import jax
import jax.numpy as jnp
from jax.experimental import pallas as pl
from jax.experimental.pallas import tpu as pltpu


_LANE = 128
_ROW_ALIGN = 32                       # chunk starts stay tile-aligned for f32/bf16/int8
_TARGET_CHUNK_BYTES = 8 * 1024 * 1024  # ~8 MiB per DMA chunk
_MAX_CHUNKS = 8                        # static unroll cap inside the kernel
_N_INFLIGHT = 4                        # concurrent HBM->HBM DMAs in flight


def _make_hbm_copy_kernel(chunks, n_inflight, rows):
    """Kernel factory: copy a 2-D HBM buffer to another HBM buffer using a
    ring of up to `n_inflight` concurrent chunked DMAs (no VMEM bounce)."""

    def kernel(x_hbm, o_hbm, sems):
        issued = []
        for j, (start, size) in enumerate(chunks):
            if start == 0 and size == rows:
                src, dst = x_hbm, o_hbm                       # whole-buffer copy
            else:
                src = x_hbm.at[pl.ds(start, size), :]
                dst = o_hbm.at[pl.ds(start, size), :]
            cp = pltpu.make_async_copy(src, dst, sems.at[j % n_inflight])
            if j >= n_inflight:
                issued[j - n_inflight].wait()                 # free this slot
            cp.start()
            issued.append(cp)
        for cp in issued[max(0, len(issued) - n_inflight):]:  # drain the ring
            cp.wait()

    return kernel


def _pallas_hbm_to_hbm_copy_2d(x2d: jax.Array) -> jax.Array:
    """Materialize a copy of a (rows, width) lane-dense slab with direct
    chunked HBM->HBM DMA (no HBM->VMEM->VMEM->HBM pipeline)."""
    rows, width = x2d.shape
    itemsize = x2d.dtype.itemsize
    total_bytes = rows * width * itemsize

    # Static chunking: ~8 MiB chunks, at most _MAX_CHUNKS, 32-row aligned starts.
    n_chunks = max(1, min(_MAX_CHUNKS, -(-total_bytes // _TARGET_CHUNK_BYTES)))
    chunk_rows = -(-rows // n_chunks)
    chunk_rows = max(_ROW_ALIGN, -(-chunk_rows // _ROW_ALIGN) * _ROW_ALIGN)
    chunks = []
    start = 0
    while start < rows:
        size = min(chunk_rows, rows - start)
        chunks.append((start, size))
        start += size
    n_inflight = min(_N_INFLIGHT, len(chunks))

    kernel = _make_hbm_copy_kernel(tuple(chunks), n_inflight, rows)

    return pl.pallas_call(
        kernel,
        out_shape=jax.ShapeDtypeStruct((rows, width), x2d.dtype),
        grid_spec=pltpu.PrefetchScalarGridSpec(
            num_scalar_prefetch=0,
            grid=(1,),
            in_specs=[pl.BlockSpec(memory_space=pl.ANY)],
            out_specs=pl.BlockSpec(memory_space=pl.ANY),
            scratch_shapes=[pltpu.SemaphoreType.DMA((n_inflight,))],
        ),
        compiler_params=pltpu.CompilerParams(
            dimension_semantics=("arbitrary",)),
        cost_estimate=pl.CostEstimate(
            flops=0,
            transcendentals=0,
            bytes_accessed=2 * total_bytes),
    )(x2d)


class Reshape:
    """JAX/Pallas equivalent of the PyTorch Reshape(nn.Module): x.view(shape).

    By default this is a metadata-only reshape (zero HBM traffic) — the
    fastest possible implementation of `view`.  Pass `materialize=True` to
    force a fresh buffer via the Pallas HBM->HBM DMA copy kernel.
    """

    def __init__(self, *args, materialize: bool = False):
        self.shape = args
        self.materialize = materialize

    def _resolve_shape(self, x: jax.Array):
        shape = list(self.shape)
        n = int(np.prod(x.shape)) if x.ndim > 0 else 1
        if -1 in shape:
            idx = shape.index(-1)
            known = int(np.prod([s for s in shape if s != -1]))
            assert known != 0 and n % known == 0, "invalid shape for view"
            shape[idx] = n // known
        assert int(np.prod(shape)) == n, "shape is invalid for input size"
        return tuple(shape), n

    def __call__(self, x: jax.Array) -> jax.Array:
        shape, n = self._resolve_shape(x)

        if not self.materialize:
            # Default: metadata-only reshape (bitcast under XLA) — zero bytes moved.
            return x.reshape(shape)

        if n == 0 or n % _LANE != 0:
            # No lane-dense relabel possible: metadata-only reshape is exact
            # view semantics and strictly faster than any padded copy.
            return x.reshape(shape)

        # Widest lane-dense minor dim that divides n (layout plumbing only).
        width = _LANE
        for w in (1024, 512, 256, _LANE):
            if n % w == 0:
                width = w
                break

        x2d = x.reshape(n // width, width)        # metadata-only relabel
        out2d = _pallas_hbm_to_hbm_copy_2d(x2d)   # single HBM read+write pass
        return out2d.reshape(shape)               # metadata-only relabel


if __name__ == "__main__":
    key = jax.random.PRNGKey(0)

    # Small NCHW-style input, consistent with a typical Reshape(B, -1) usage.
    x = jax.random.normal(key, (2, 4, 16, 16), dtype=jnp.float32)

    # Default (metadata-only) path — the recommended, zero-cost implementation.
    y = jax.block_until_ready(Reshape(2, -1)(x))
    assert y.shape == (2, 4 * 16 * 16) and y.dtype == x.dtype
    np.testing.assert_array_equal(np.asarray(y), np.asarray(x).reshape(2, -1))

    # Opt-in materialized path — exercises the Pallas HBM->HBM DMA copy kernel.
    ym = jax.block_until_ready(Reshape(2, -1, materialize=True)(x))
    assert ym.shape == (2, 4 * 16 * 16) and ym.dtype == x.dtype
    np.testing.assert_array_equal(np.asarray(ym), np.asarray(x).reshape(2, -1))

    # bf16 input through the materialized kernel path.
    xb = jax.random.normal(jax.random.PRNGKey(1), (8, 16, 32), dtype=jnp.bfloat16)
    yb = jax.block_until_ready(Reshape(-1, 64, materialize=True)(xb))
    np.testing.assert_array_equal(np.asarray(yb), np.asarray(xb).reshape(-1, 64))

    # Element count not divisible by 128 -> metadata-only fallback path.
    xr = jax.random.normal(jax.random.PRNGKey(2), (3, 5, 7), dtype=jnp.float32)
    yr = jax.block_until_ready(Reshape(5, -1, materialize=True)(xr))
    np.testing.assert_array_equal(np.asarray(yr), np.asarray(xr).reshape(5, -1))

    print("KERNEL_OK")
</pallas_src>

<mosaic_0001>
module attributes {stable_mosaic.version = 11 : i64} {
  func.func @kernel(%arg0: i32, %arg1: memref<2x1024xf32, #tpu.memory_space<any>>, %arg2: memref<2x1024xf32, #tpu.memory_space<any>>, %arg3: memref<1x!tpu.dma_semaphore, #tpu.memory_space<semaphore_mem>>) attributes {dimension_semantics = [#tpu.dimension_semantics<arbitrary>], iteration_bounds = array<i64: 1>, scalar_prefetch = 0 : i64, scratch_operands = 1 : i64, tpu.core_type = #tpu.core_type<tc>, window_params = [{}, {}]} {
    %c0_i32 = arith.constant 0 : i32
    %0 = tpu.memref_slice %arg3[%c0_i32] : memref<1x!tpu.dma_semaphore, #tpu.memory_space<semaphore_mem>> -> memref<1x!tpu.dma_semaphore, #tpu.memory_space<semaphore_mem>>
    %1 = tpu.memref_squeeze %0 : memref<1x!tpu.dma_semaphore, #tpu.memory_space<semaphore_mem>> -> memref<!tpu.dma_semaphore, #tpu.memory_space<semaphore_mem>>
    tpu.enqueue_dma source(%arg1 : memref<2x1024xf32, #tpu.memory_space<any>>) target(%arg2 : memref<2x1024xf32, #tpu.memory_space<any>>) target_semaphore(%1 : memref<!tpu.dma_semaphore, #tpu.memory_space<semaphore_mem>>)
    %c0_i32_0 = arith.constant 0 : i32
    %2 = tpu.memref_slice %arg3[%c0_i32_0] : memref<1x!tpu.dma_semaphore, #tpu.memory_space<semaphore_mem>> -> memref<1x!tpu.dma_semaphore, #tpu.memory_space<semaphore_mem>>
    %3 = tpu.memref_squeeze %2 : memref<1x!tpu.dma_semaphore, #tpu.memory_space<semaphore_mem>> -> memref<!tpu.dma_semaphore, #tpu.memory_space<semaphore_mem>>
    tpu.wait_dma2 semaphore(%3 : memref<!tpu.dma_semaphore, #tpu.memory_space<semaphore_mem>>) src(%arg1 : memref<2x1024xf32, #tpu.memory_space<any>>) dst(%arg2 : memref<2x1024xf32, #tpu.memory_space<any>>)
    return
  }
}

</mosaic_0001>

<bundles_post_ra>
// kernel: tpu_custom_call.1
= control target key start
LH: loop header
LB: loop body
LE: loop exit
PB: predicated region body
PF: predicated region fallthrough
CT: control target
= control target key end

     0   :  { %s35_s6 = smov [#allocation2]   ;;  %s36_s7 = smov [#allocation3]   ;;  %s54_s0 = inlined_call_operand.hbm [shape: f32[2,1024], index: 0, kind: input, shape index: {}]   ;;  %s55_s1 = inlined_call_operand.hbm [shape: f32[2,1024], index: 1, kind: output, shape index: {}]  }
   0x1   :  { %s37_s8 = smov 0  }
   0x2   :  { %18 = dma.general %s54_s0, 256, %s55_s1, %s35_s6, %s36_s7, [#allocation4], %s37_s8, 0  }
   0x3   :  { %33 = dma.done.wait [#allocation2], 256 }
   0x4   :  { %34 = vsyncadd [#allocation2], 4294967040 }
   0x5   :  { %23 = vsyncmov [#allocation2] }
   0x8   :  { %s24_s13 = vpop.sfrf %23 }
   0x9   :  { %p29_p0 = scmp.ne.s32.totalorder %s24_s13, 0 }
   0xb   :  { %28 = shalt.err (%p29_p0)  }

</bundles_post_ra>
